<compile_context>
chip_gen: v5e
topology: v5e:2x2
jax: 0.10.0
libtpu: 0.0.40
codegen_flags: <defaults>
</compile_context>

<pallas_src>
import jax
import jax.numpy as jnp
from jax.experimental import pallas as pl
from jax.experimental.pallas import tpu as pltpu

BN_EPS = 1e-5       # BatchNorm1d eps
GINE_EPS = 0.0      # GINEConv eps (PyG default, train_eps=False)


def _gine_encoder_kernel(src_ref, dst_ref, x_ref, ea_ref, w_ref, vec_ref, o_ref):
    n = x_ref.shape[0]
    e_pad = ea_ref.shape[0]
    inv_n = 1.0 / n

    # One-hot gather (E_pad, N) and scatter (N, E_pad) built in-kernel from the
    # int32 index vectors.  Padded edges carry index -1 -> all-zero rows/cols.
    # 0/1 values are exact in bf16.
    src = src_ref[...]                                            # (E_pad, 1) i32
    dst = dst_ref[...]                                            # (1, E_pad) i32
    col_iota = jax.lax.broadcasted_iota(jnp.int32, (e_pad, n), 1)
    row_iota = jax.lax.broadcasted_iota(jnp.int32, (n, e_pad), 0)
    gmat = jnp.where(col_iota == src, 1.0, 0.0).astype(jnp.bfloat16)   # (E_pad, N)
    smat = jnp.where(row_iota == dst, 1.0, 0.0).astype(jnp.bfloat16)   # (N, E_pad)

    ea = ea_ref[...].astype(jnp.float32)                          # (E_pad, Dp)
    h = x_ref[...]                                                # (N, Dp) f32

    def layer(h, li):
        # --- GINEConv (sum aggregation, eps = 0) --------------------------
        xj = jnp.dot(gmat, h.astype(jnp.bfloat16),
                     preferred_element_type=jnp.float32)          # gather (MXU)
        msg = jnp.maximum(xj + ea, 0.0)                           # relu(x_j + e)
        agg = jnp.dot(smat, msg.astype(jnp.bfloat16),
                      preferred_element_type=jnp.float32)         # scatter-sum (MXU)
        z = agg + (1.0 + GINE_EPS) * h
        w = w_ref[li]                                             # (Dp, Dp) bf16
        b = vec_ref[3 * li + 0:3 * li + 1, :]                     # (1, Dp) f32
        gamma = vec_ref[3 * li + 1:3 * li + 2, :]
        beta = vec_ref[3 * li + 2:3 * li + 3, :]
        hw = jnp.dot(z.astype(jnp.bfloat16), w,
                     preferred_element_type=jnp.float32) + b      # Linear (MXU)
        h2 = jnp.maximum(hw, 0.0)                                 # encoder ReLU

        # --- BatchNorm1d (training-mode batch stats, single fused pass) ----
        mean = jnp.sum(h2, axis=0, keepdims=True) * inv_n
        ex2 = jnp.sum(h2 * h2, axis=0, keepdims=True) * inv_n
        var = jnp.maximum(ex2 - mean * mean, 0.0)     # clamp f32 cancellation
        scale = gamma * jax.lax.rsqrt(var + BN_EPS)   # fold affine into FMA
        shift = beta - mean * scale
        return h2 * scale + shift

    for li in range(3):           # static unroll: 3 sequentially coupled layers
        h = layer(h, li)
    o_ref[...] = h


def _full_spec(shape):
    return pl.BlockSpec(shape, lambda: tuple(0 for _ in shape))


def _ceil_to(v, m):
    return ((v + m - 1) // m) * m


def _pad_axis(x, target, axis):
    pad = target - x.shape[axis]
    if pad <= 0:
        return x
    widths = [(0, 0)] * x.ndim
    widths[axis] = (0, pad)
    return jnp.pad(x, widths)


@jax.jit
def gine_encoder(edge_index, node_attr, edge_attr, params):
    """edge_index: (2, E) int32, node_attr: (N, D) f32, edge_attr: (E, D) f32."""
    n, d = node_attr.shape
    e = edge_index.shape[1]

    d_pad = _ceil_to(d, 128)            # lane-dense feature axis
    e_pad = _ceil_to(max(e, 1), 16)     # bf16 sublane tile = 16
    # NOTE: N is left unpadded (padding nodes would corrupt BatchNorm stats
    # without a valid-row mask); N=16 in the example is sublane-aligned.

    # Edge endpoints, padded with -1 so padded edges match no node.
    src = jnp.pad(edge_index[0].astype(jnp.int32), (0, e_pad - e),
                  constant_values=-1).reshape(e_pad, 1)
    dst = jnp.pad(edge_index[1].astype(jnp.int32), (0, e_pad - e),
                  constant_values=-1).reshape(1, e_pad)

    x_p = _pad_axis(node_attr.astype(jnp.float32), d_pad, 1)
    ea_p = _pad_axis(_pad_axis(edge_attr, d_pad, 1), e_pad, 0).astype(jnp.bfloat16)

    # Collapse per-layer parameters: stacked weights + stacked b/gamma/beta rows.
    w_list, vec_rows = [], []
    for (w, b, g, be) in params:
        w_list.append(_pad_axis(_pad_axis(w.astype(jnp.float32), d_pad, 1), d_pad, 0))
        for v in (b, g, be):
            vec_rows.append(_pad_axis(v.reshape(1, -1).astype(jnp.float32), d_pad, 1))
    w_stack = jnp.stack(w_list, axis=0).astype(jnp.bfloat16)      # (3, Dp, Dp)
    vec_stack = jnp.concatenate(vec_rows, axis=0)                  # (9, Dp) f32

    args = (src, dst, x_p, ea_p, w_stack, vec_stack)
    in_specs = [_full_spec(a.shape) for a in args]

    # VMEM budget derived from actual padded shapes (+ intermediates + slack).
    bytes_in = sum(a.size * a.dtype.itemsize for a in args)
    bytes_out = n * d_pad * 4
    bytes_tmp = (2 * e_pad * n * 2              # gmat, smat (bf16)
                 + 4 * e_pad * d_pad * 4        # xj, msg (+ bf16 copies)
                 + 8 * n * d_pad * 4)           # agg, z, hw, h2, BN temps
    vmem_limit = int(min(max(2 * (bytes_in + bytes_out) + bytes_tmp + (2 << 20),
                             8 << 20), 48 << 20))

    flops = 3 * (2 * e_pad * n * d_pad          # gather
                 + 2 * n * e_pad * d_pad        # scatter-sum
                 + 2 * n * d_pad * d_pad)       # Linear
    cost = pl.CostEstimate(flops=flops, transcendentals=3 * d_pad,
                           bytes_accessed=bytes_in + bytes_out)

    out_p = pl.pallas_call(
        _gine_encoder_kernel,
        out_shape=jax.ShapeDtypeStruct((n, d_pad), jnp.float32),
        in_specs=in_specs,
        out_specs=_full_spec((n, d_pad)),
        compiler_params=pltpu.CompilerParams(vmem_limit_bytes=vmem_limit),
        cost_estimate=cost,
    )(*args)

    return out_p[:, :d]


def init_params(key, dim):
    """3 x (GINEConv Linear W,b ; BatchNorm gamma,beta), deterministic synthetic init."""
    params = []
    for i in range(3):
        kw, kb, kg, kbe = jax.random.split(jax.random.fold_in(key, i), 4)
        w = jax.random.normal(kw, (dim, dim), jnp.float32) / jnp.sqrt(dim)
        b = 0.1 * jax.random.normal(kb, (1, dim), jnp.float32)
        g = 1.0 + 0.1 * jax.random.normal(kg, (1, dim), jnp.float32)
        be = 0.1 * jax.random.normal(kbe, (1, dim), jnp.float32)
        params.append((w, b, g, be))
    return tuple(params)


if __name__ == "__main__":
    key = jax.random.PRNGKey(0)
    num_nodes = 16
    dim = 32
    num_edges = 32

    k_src, k_dst, k_x, k_e, k_p = jax.random.split(key, 5)
    src = jax.random.randint(k_src, (num_edges,), 0, num_nodes, jnp.int32)
    dst = jax.random.randint(k_dst, (num_edges,), 0, num_nodes, jnp.int32)
    edge_index = jnp.stack([src, dst], axis=0)                         # (2, E)
    node_attr = jax.random.normal(k_x, (num_nodes, dim), jnp.float32)  # (N, D)
    edge_attr = jax.random.normal(k_e, (num_edges, dim), jnp.float32)  # (E, D)

    params = init_params(k_p, dim)

    out = gine_encoder(edge_index, node_attr, edge_attr, params)
    jax.block_until_ready(out)
    assert out.shape == (num_nodes, dim) and out.dtype == jnp.float32
    assert not bool(jnp.any(jnp.isnan(out)))
    print("KERNEL_OK")
</pallas_src>

<mosaic_0001>
module attributes {stable_mosaic.version = 11 : i64} {
  func.func @_gine_encoder_kernel(%arg0: memref<32x1xi32, #tpu.memory_space<vmem>>, %arg1: memref<1x32xi32, #tpu.memory_space<vmem>>, %arg2: memref<16x128xf32, #tpu.memory_space<vmem>>, %arg3: memref<32x128xbf16, #tpu.memory_space<vmem>>, %arg4: memref<3x128x128xbf16, #tpu.memory_space<vmem>>, %arg5: memref<9x128xf32, #tpu.memory_space<vmem>>, %arg6: memref<16x128xf32, #tpu.memory_space<vmem>>) attributes {dimension_semantics = [], scalar_prefetch = 0 : i64, scratch_operands = 0 : i64, tpu.core_type = #tpu.core_type<tc>} {
    %c0 = arith.constant 0 : index
    %c0_0 = arith.constant 0 : index
    %0 = vector.load %arg0[%c0, %c0_0] : memref<32x1xi32, #tpu.memory_space<vmem>>, vector<32x1xi32>
    %c0_1 = arith.constant 0 : index
    %c0_2 = arith.constant 0 : index
    %1 = vector.load %arg1[%c0_1, %c0_2] : memref<1x32xi32, #tpu.memory_space<vmem>>, vector<1x32xi32>
    %2 = tpu.iota {dimensions = array<i32: 1>} : vector<32x16xi32>
    %3 = tpu.iota {dimensions = array<i32: 0>} : vector<16x32xi32>
    %4 = vector.broadcast %0 : vector<32x1xi32> to vector<32x16xi32>
    %5 = arith.cmpi eq, %2, %4 : vector<32x16xi32>
    %cst = arith.constant 1.000000e+00 : f32
    %cst_3 = arith.constant 0.000000e+00 : f32
    %6 = vector.broadcast %cst : f32 to vector<32x16xf32>
    %7 = vector.broadcast %cst_3 : f32 to vector<32x16xf32>
    %8 = arith.select %5, %6, %7 : vector<32x16xi1>, vector<32x16xf32>
    %9 = arith.truncf %8 : vector<32x16xf32> to vector<32x16xbf16>
    %10 = vector.broadcast %1 : vector<1x32xi32> to vector<16x32xi32>
    %11 = arith.cmpi eq, %3, %10 : vector<16x32xi32>
    %cst_4 = arith.constant 1.000000e+00 : f32
    %cst_5 = arith.constant 0.000000e+00 : f32
    %12 = vector.broadcast %cst_4 : f32 to vector<16x32xf32>
    %13 = vector.broadcast %cst_5 : f32 to vector<16x32xf32>
    %14 = arith.select %11, %12, %13 : vector<16x32xi1>, vector<16x32xf32>
    %15 = arith.truncf %14 : vector<16x32xf32> to vector<16x32xbf16>
    %c0_6 = arith.constant 0 : index
    %c0_7 = arith.constant 0 : index
    %16 = vector.load %arg3[%c0_6, %c0_7] : memref<32x128xbf16, #tpu.memory_space<vmem>>, vector<32x128xbf16>
    %17 = arith.extf %16 : vector<32x128xbf16> to vector<32x128xf32>
    %c0_8 = arith.constant 0 : index
    %c0_9 = arith.constant 0 : index
    %18 = vector.load %arg2[%c0_8, %c0_9] : memref<16x128xf32, #tpu.memory_space<vmem>>, vector<16x128xf32>
    %19 = arith.truncf %18 : vector<16x128xf32> to vector<16x128xbf16>
    %cst_10 = arith.constant dense<0.000000e+00> : vector<32x128xf32>
    %20 = tpu.matmul %9, %19, %cst_10 {dimension_numbers = #tpu.dot_dimension_numbers<[1], [0], [0], [1], [0, 0, 1, 1], [], []>} : vector<32x16xbf16>, vector<16x128xbf16>, vector<32x128xf32> -> vector<32x128xf32>
    %21 = arith.addf %20, %17 : vector<32x128xf32>
    %cst_11 = arith.constant 0.000000e+00 : f32
    %22 = vector.broadcast %cst_11 : f32 to vector<32x128xf32>
    %23 = arith.maximumf %21, %22 : vector<32x128xf32>
    %24 = arith.truncf %23 : vector<32x128xf32> to vector<32x128xbf16>
    %cst_12 = arith.constant dense<0.000000e+00> : vector<16x128xf32>
    %25 = tpu.matmul %15, %24, %cst_12 {dimension_numbers = #tpu.dot_dimension_numbers<[1], [0], [0], [1], [0, 0, 1, 1], [], []>} : vector<16x32xbf16>, vector<32x128xbf16>, vector<16x128xf32> -> vector<16x128xf32>
    %cst_13 = arith.constant 1.000000e+00 : f32
    %26 = vector.broadcast %cst_13 : f32 to vector<16x128xf32>
    %27 = arith.mulf %26, %18 : vector<16x128xf32>
    %28 = arith.addf %25, %27 : vector<16x128xf32>
    %c0_14 = arith.constant 0 : index
    %c0_15 = arith.constant 0 : index
    %c0_16 = arith.constant 0 : index
    %29 = vector.load %arg4[%c0_14, %c0_15, %c0_16] : memref<3x128x128xbf16, #tpu.memory_space<vmem>>, vector<1x128x128xbf16>
    %30 = vector.shape_cast %29 : vector<1x128x128xbf16> to vector<128x128xbf16>
    %c0_17 = arith.constant 0 : index
    %c0_18 = arith.constant 0 : index
    %31 = vector.load %arg5[%c0_17, %c0_18] : memref<9x128xf32, #tpu.memory_space<vmem>>, vector<1x128xf32>
    %c1 = arith.constant 1 : index
    %c0_19 = arith.constant 0 : index
    %32 = vector.load %arg5[%c1, %c0_19] : memref<9x128xf32, #tpu.memory_space<vmem>>, vector<1x128xf32>
    %c2 = arith.constant 2 : index
    %c0_20 = arith.constant 0 : index
    %33 = vector.load %arg5[%c2, %c0_20] : memref<9x128xf32, #tpu.memory_space<vmem>>, vector<1x128xf32>
    %34 = arith.truncf %28 : vector<16x128xf32> to vector<16x128xbf16>
    %cst_21 = arith.constant dense<0.000000e+00> : vector<16x128xf32>
    %35 = tpu.matmul %34, %30, %cst_21 {dimension_numbers = #tpu.dot_dimension_numbers<[1], [0], [0], [1], [0, 0, 1, 1], [], []>} : vector<16x128xbf16>, vector<128x128xbf16>, vector<16x128xf32> -> vector<16x128xf32>
    %36 = vector.broadcast %31 : vector<1x128xf32> to vector<16x128xf32>
    %37 = arith.addf %35, %36 : vector<16x128xf32>
    %cst_22 = arith.constant 0.000000e+00 : f32
    %38 = vector.broadcast %cst_22 : f32 to vector<16x128xf32>
    %39 = arith.maximumf %37, %38 : vector<16x128xf32>
    %cst_23 = arith.constant dense<0.000000e+00> : vector<128xf32>
    %40 = vector.multi_reduction <add>, %39, %cst_23 [0] : vector<16x128xf32> to vector<128xf32>
    %41 = vector.shape_cast %40 : vector<128xf32> to vector<1x128xf32>
    %cst_24 = arith.constant 6.250000e-02 : f32
    %42 = vector.broadcast %cst_24 : f32 to vector<1x128xf32>
    %43 = arith.mulf %41, %42 : vector<1x128xf32>
    %44 = arith.mulf %39, %39 : vector<16x128xf32>
    %cst_25 = arith.constant dense<0.000000e+00> : vector<128xf32>
    %45 = vector.multi_reduction <add>, %44, %cst_25 [0] : vector<16x128xf32> to vector<128xf32>
    %46 = vector.shape_cast %45 : vector<128xf32> to vector<1x128xf32>
    %cst_26 = arith.constant 6.250000e-02 : f32
    %47 = vector.broadcast %cst_26 : f32 to vector<1x128xf32>
    %48 = arith.mulf %46, %47 : vector<1x128xf32>
    %49 = arith.mulf %43, %43 : vector<1x128xf32>
    %50 = arith.subf %48, %49 : vector<1x128xf32>
    %cst_27 = arith.constant 0.000000e+00 : f32
    %51 = vector.broadcast %cst_27 : f32 to vector<1x128xf32>
    %52 = arith.maximumf %50, %51 : vector<1x128xf32>
    %cst_28 = arith.constant 9.99999974E-6 : f32
    %53 = vector.broadcast %cst_28 : f32 to vector<1x128xf32>
    %54 = arith.addf %52, %53 : vector<1x128xf32>
    %55 = math.rsqrt %54 : vector<1x128xf32>
    %56 = arith.mulf %32, %55 : vector<1x128xf32>
    %57 = arith.mulf %43, %56 : vector<1x128xf32>
    %58 = arith.subf %33, %57 : vector<1x128xf32>
    %59 = vector.broadcast %56 : vector<1x128xf32> to vector<16x128xf32>
    %60 = arith.mulf %39, %59 : vector<16x128xf32>
    %61 = vector.broadcast %58 : vector<1x128xf32> to vector<16x128xf32>
    %62 = arith.addf %60, %61 : vector<16x128xf32>
    %63 = arith.truncf %62 : vector<16x128xf32> to vector<16x128xbf16>
    %cst_29 = arith.constant dense<0.000000e+00> : vector<32x128xf32>
    %64 = tpu.matmul %9, %63, %cst_29 {dimension_numbers = #tpu.dot_dimension_numbers<[1], [0], [0], [1], [0, 0, 1, 1], [], []>} : vector<32x16xbf16>, vector<16x128xbf16>, vector<32x128xf32> -> vector<32x128xf32>
    %65 = arith.addf %64, %17 : vector<32x128xf32>
    %cst_30 = arith.constant 0.000000e+00 : f32
    %66 = vector.broadcast %cst_30 : f32 to vector<32x128xf32>
    %67 = arith.maximumf %65, %66 : vector<32x128xf32>
    %68 = arith.truncf %67 : vector<32x128xf32> to vector<32x128xbf16>
    %cst_31 = arith.constant dense<0.000000e+00> : vector<16x128xf32>
    %69 = tpu.matmul %15, %68, %cst_31 {dimension_numbers = #tpu.dot_dimension_numbers<[1], [0], [0], [1], [0, 0, 1, 1], [], []>} : vector<16x32xbf16>, vector<32x128xbf16>, vector<16x128xf32> -> vector<16x128xf32>
    %cst_32 = arith.constant 1.000000e+00 : f32
    %70 = vector.broadcast %cst_32 : f32 to vector<16x128xf32>
    %71 = arith.mulf %70, %62 : vector<16x128xf32>
    %72 = arith.addf %69, %71 : vector<16x128xf32>
    %c1_33 = arith.constant 1 : index
    %c0_34 = arith.constant 0 : index
    %c0_35 = arith.constant 0 : index
    %73 = vector.load %arg4[%c1_33, %c0_34, %c0_35] : memref<3x128x128xbf16, #tpu.memory_space<vmem>>, vector<1x128x128xbf16>
    %74 = vector.shape_cast %73 : vector<1x128x128xbf16> to vector<128x128xbf16>
    %c3 = arith.constant 3 : index
    %c0_36 = arith.constant 0 : index
    %75 = vector.load %arg5[%c3, %c0_36] : memref<9x128xf32, #tpu.memory_space<vmem>>, vector<1x128xf32>
    %c4 = arith.constant 4 : index
    %c0_37 = arith.constant 0 : index
    %76 = vector.load %arg5[%c4, %c0_37] : memref<9x128xf32, #tpu.memory_space<vmem>>, vector<1x128xf32>
    %c5 = arith.constant 5 : index
    %c0_38 = arith.constant 0 : index
    %77 = vector.load %arg5[%c5, %c0_38] : memref<9x128xf32, #tpu.memory_space<vmem>>, vector<1x128xf32>
    %78 = arith.truncf %72 : vector<16x128xf32> to vector<16x128xbf16>
    %cst_39 = arith.constant dense<0.000000e+00> : vector<16x128xf32>
    %79 = tpu.matmul %78, %74, %cst_39 {dimension_numbers = #tpu.dot_dimension_numbers<[1], [0], [0], [1], [0, 0, 1, 1], [], []>} : vector<16x128xbf16>, vector<128x128xbf16>, vector<16x128xf32> -> vector<16x128xf32>
    %80 = vector.broadcast %75 : vector<1x128xf32> to vector<16x128xf32>
    %81 = arith.addf %79, %80 : vector<16x128xf32>
    %cst_40 = arith.constant 0.000000e+00 : f32
    %82 = vector.broadcast %cst_40 : f32 to vector<16x128xf32>
    %83 = arith.maximumf %81, %82 : vector<16x128xf32>
    %cst_41 = arith.constant dense<0.000000e+00> : vector<128xf32>
    %84 = vector.multi_reduction <add>, %83, %cst_41 [0] : vector<16x128xf32> to vector<128xf32>
    %85 = vector.shape_cast %84 : vector<128xf32> to vector<1x128xf32>
    %cst_42 = arith.constant 6.250000e-02 : f32
    %86 = vector.broadcast %cst_42 : f32 to vector<1x128xf32>
    %87 = arith.mulf %85, %86 : vector<1x128xf32>
    %88 = arith.mulf %83, %83 : vector<16x128xf32>
    %cst_43 = arith.constant dense<0.000000e+00> : vector<128xf32>
    %89 = vector.multi_reduction <add>, %88, %cst_43 [0] : vector<16x128xf32> to vector<128xf32>
    %90 = vector.shape_cast %89 : vector<128xf32> to vector<1x128xf32>
    %cst_44 = arith.constant 6.250000e-02 : f32
    %91 = vector.broadcast %cst_44 : f32 to vector<1x128xf32>
    %92 = arith.mulf %90, %91 : vector<1x128xf32>
    %93 = arith.mulf %87, %87 : vector<1x128xf32>
    %94 = arith.subf %92, %93 : vector<1x128xf32>
    %cst_45 = arith.constant 0.000000e+00 : f32
    %95 = vector.broadcast %cst_45 : f32 to vector<1x128xf32>
    %96 = arith.maximumf %94, %95 : vector<1x128xf32>
    %cst_46 = arith.constant 9.99999974E-6 : f32
    %97 = vector.broadcast %cst_46 : f32 to vector<1x128xf32>
    %98 = arith.addf %96, %97 : vector<1x128xf32>
    %99 = math.rsqrt %98 : vector<1x128xf32>
    %100 = arith.mulf %76, %99 : vector<1x128xf32>
    %101 = arith.mulf %87, %100 : vector<1x128xf32>
    %102 = arith.subf %77, %101 : vector<1x128xf32>
    %103 = vector.broadcast %100 : vector<1x128xf32> to vector<16x128xf32>
    %104 = arith.mulf %83, %103 : vector<16x128xf32>
    %105 = vector.broadcast %102 : vector<1x128xf32> to vector<16x128xf32>
    %106 = arith.addf %104, %105 : vector<16x128xf32>
    %107 = arith.truncf %106 : vector<16x128xf32> to vector<16x128xbf16>
    %cst_47 = arith.constant dense<0.000000e+00> : vector<32x128xf32>
    %108 = tpu.matmul %9, %107, %cst_47 {dimension_numbers = #tpu.dot_dimension_numbers<[1], [0], [0], [1], [0, 0, 1, 1], [], []>} : vector<32x16xbf16>, vector<16x128xbf16>, vector<32x128xf32> -> vector<32x128xf32>
    %109 = arith.addf %108, %17 : vector<32x128xf32>
    %cst_48 = arith.constant 0.000000e+00 : f32
    %110 = vector.broadcast %cst_48 : f32 to vector<32x128xf32>
    %111 = arith.maximumf %109, %110 : vector<32x128xf32>
    %112 = arith.truncf %111 : vector<32x128xf32> to vector<32x128xbf16>
    %cst_49 = arith.constant dense<0.000000e+00> : vector<16x128xf32>
    %113 = tpu.matmul %15, %112, %cst_49 {dimension_numbers = #tpu.dot_dimension_numbers<[1], [0], [0], [1], [0, 0, 1, 1], [], []>} : vector<16x32xbf16>, vector<32x128xbf16>, vector<16x128xf32> -> vector<16x128xf32>
    %cst_50 = arith.constant 1.000000e+00 : f32
    %114 = vector.broadcast %cst_50 : f32 to vector<16x128xf32>
    %115 = arith.mulf %114, %106 : vector<16x128xf32>
    %116 = arith.addf %113, %115 : vector<16x128xf32>
    %c2_51 = arith.constant 2 : index
    %c0_52 = arith.constant 0 : index
    %c0_53 = arith.constant 0 : index
    %117 = vector.load %arg4[%c2_51, %c0_52, %c0_53] : memref<3x128x128xbf16, #tpu.memory_space<vmem>>, vector<1x128x128xbf16>
    %118 = vector.shape_cast %117 : vector<1x128x128xbf16> to vector<128x128xbf16>
    %c6 = arith.constant 6 : index
    %c0_54 = arith.constant 0 : index
    %119 = vector.load %arg5[%c6, %c0_54] : memref<9x128xf32, #tpu.memory_space<vmem>>, vector<1x128xf32>
    %c7 = arith.constant 7 : index
    %c0_55 = arith.constant 0 : index
    %120 = vector.load %arg5[%c7, %c0_55] : memref<9x128xf32, #tpu.memory_space<vmem>>, vector<1x128xf32>
    %c8 = arith.constant 8 : index
    %c0_56 = arith.constant 0 : index
    %121 = vector.load %arg5[%c8, %c0_56] : memref<9x128xf32, #tpu.memory_space<vmem>>, vector<1x128xf32>
    %122 = arith.truncf %116 : vector<16x128xf32> to vector<16x128xbf16>
    %cst_57 = arith.constant dense<0.000000e+00> : vector<16x128xf32>
    %123 = tpu.matmul %122, %118, %cst_57 {dimension_numbers = #tpu.dot_dimension_numbers<[1], [0], [0], [1], [0, 0, 1, 1], [], []>} : vector<16x128xbf16>, vector<128x128xbf16>, vector<16x128xf32> -> vector<16x128xf32>
    %124 = vector.broadcast %119 : vector<1x128xf32> to vector<16x128xf32>
    %125 = arith.addf %123, %124 : vector<16x128xf32>
    %cst_58 = arith.constant 0.000000e+00 : f32
    %126 = vector.broadcast %cst_58 : f32 to vector<16x128xf32>
    %127 = arith.maximumf %125, %126 : vector<16x128xf32>
    %cst_59 = arith.constant dense<0.000000e+00> : vector<128xf32>
    %128 = vector.multi_reduction <add>, %127, %cst_59 [0] : vector<16x128xf32> to vector<128xf32>
    %129 = vector.shape_cast %128 : vector<128xf32> to vector<1x128xf32>
    %cst_60 = arith.constant 6.250000e-02 : f32
    %130 = vector.broadcast %cst_60 : f32 to vector<1x128xf32>
    %131 = arith.mulf %129, %130 : vector<1x128xf32>
    %132 = arith.mulf %127, %127 : vector<16x128xf32>
    %cst_61 = arith.constant dense<0.000000e+00> : vector<128xf32>
    %133 = vector.multi_reduction <add>, %132, %cst_61 [0] : vector<16x128xf32> to vector<128xf32>
    %134 = vector.shape_cast %133 : vector<128xf32> to vector<1x128xf32>
    %cst_62 = arith.constant 6.250000e-02 : f32
    %135 = vector.broadcast %cst_62 : f32 to vector<1x128xf32>
    %136 = arith.mulf %134, %135 : vector<1x128xf32>
    %137 = arith.mulf %131, %131 : vector<1x128xf32>
    %138 = arith.subf %136, %137 : vector<1x128xf32>
    %cst_63 = arith.constant 0.000000e+00 : f32
    %139 = vector.broadcast %cst_63 : f32 to vector<1x128xf32>
    %140 = arith.maximumf %138, %139 : vector<1x128xf32>
    %cst_64 = arith.constant 9.99999974E-6 : f32
    %141 = vector.broadcast %cst_64 : f32 to vector<1x128xf32>
    %142 = arith.addf %140, %141 : vector<1x128xf32>
    %143 = math.rsqrt %142 : vector<1x128xf32>
    %144 = arith.mulf %120, %143 : vector<1x128xf32>
    %145 = arith.mulf %131, %144 : vector<1x128xf32>
    %146 = arith.subf %121, %145 : vector<1x128xf32>
    %147 = vector.broadcast %144 : vector<1x128xf32> to vector<16x128xf32>
    %148 = arith.mulf %127, %147 : vector<16x128xf32>
    %149 = vector.broadcast %146 : vector<1x128xf32> to vector<16x128xf32>
    %150 = arith.addf %148, %149 : vector<16x128xf32>
    %c0_65 = arith.constant 0 : index
    %c0_66 = arith.constant 0 : index
    %151 = vector.load %arg6[%c0_65, %c0_66] : memref<16x128xf32, #tpu.memory_space<vmem>>, vector<16x128xf32>
    tpu.vector_store %arg6[%c0_65, %c0_66], %150 {strides = array<i32>} : memref<16x128xf32, #tpu.memory_space<vmem>>, vector<16x128xf32>,
    return
  }
}

</mosaic_0001>

<bundles_post_ra>
// kernel: gine_encoder.1
= control target key start
LH: loop header
LB: loop body
LE: loop exit
PB: predicated region body
PF: predicated region fallthrough
CT: control target
= control target key end

     0   :  { %v817_v2 = vmov 0   ;;  %s1038_s0 = inlined_call_operand.vmem [shape: s32[32,1], index: 0, kind: input, shape index: {}]   ;;  %s1039_s1 = inlined_call_operand.vmem [shape: s32[1,32], index: 1, kind: input, shape index: {}]   ;;  %s1040_s2 = inlined_call_operand.vmem [shape: f32[16,128], index: 2, kind: input, shape index: {}]   ;;  %s1041_s3 = inlined_call_operand.vmem [shape: bf16[32,128], index: 3, kind: input, shape index: {}]   ;;  %s1042_s4 = inlined_call_operand.vmem [shape: bf16[3,128,128], index: 4, kind: input, shape index: {}]   ;;  %s1043_s5 = inlined_call_operand.vmem [shape: f32[9,128], index: 5, kind: input, shape index: {}]   ;;  %s1044_s6 = inlined_call_operand.hbm [shape: f32[16,128], index: 6, kind: output, shape index: {}]  }
   0x1   :  { %v25_v0 = vld [vmem:[%s1038_s0] sm:$0xff]  ;;  %v27_v1 = vld [vmem:[%s1038_s0 + $0x10] sm:$0xff]  ;;  %779 = vset.pattern.permute.xlu0 %v817_v2  ;;  %780 = vset.pattern.permute.xlu1 %v817_v2 }
   0x2   :  { %36 = vperm.xlu0 %779, %v25_v0   ;;  %42 = vperm.xlu1 %780, %v27_v1  }
   0x3   :  { %11 = vsyncpa [#allocation3], 0  ;;  %v26_v3 = vld [vmem:[%s1038_s0 + $0x8] sm:$0xff]  ;;  %v28_v4 = vld [vmem:[%s1038_s0 + $0x18] sm:$0xff]  ;;  %v30_v8 = vlaneseq  ;;  %v818_v13 = vmov 0.0   ;;  %vm74_vm2 = vcmask 130048  }
   0x4   :  { %v872_v5 = vld [vmem:[%s1040_s2] sm:$0xff]  ;;  %v877_v6 = vld [vmem:[%s1040_s2 + $0x8] sm:$0xff]  ;;  %v748_v22 = vld [vmem:[%s1042_s4 + $0x38] sm:$0xff]  ;;  %vm106_vm7 = vcmask 261120   ;;  %s819_s22 = smov [#allocation2]   ;;  %s592_s24 = sshll.u32 %s1044_s6, 4  ;;  %s593_s24 = int_to_ptr.hbm [resolvable:$true] %s592_s24 }
   0x5   :  { %v73_v7 = vpack.c.bf16 %v877_v6, %v872_v5  ;;  %v31_v10 = vand.u32 127, %v30_v8  ;;  %193 = vmatpush.bf16.msra.mxu2 %v748_v22  ;;  %v747_v24 = vld [vmem:[%s1042_s4 + $0x30] sm:$0xff]  ;;  %v746_v25 = vld [vmem:[%s1042_s4 + $0x28] sm:$0xff]  ;;  %v745_v28 = vld [vmem:[%s1042_s4 + $0x20] sm:$0xff]  ;;  %v33_v31 = vshrl.u32 %v30_v8, 7  ;;  %s820_s25 = smov 128  }
   0x6   :  { %v773_v26 = vld [vmem:[%s1041_s3 + $0x8] sm:$0xff]   ;;  %v766_v30 = vld [vmem:[%s1041_s3] sm:$0xff]   ;;  %v744_v32 = vld [vmem:[%s1042_s4 + $0x18] sm:$0xff] }
   0x7   :  { %88 = vmatpush.bf16.msra.mxu0 %v73_v7  ;;  %v904_v29 = vunpack.c.l.bf16 %v773_v26  ;;  %v912_v33 = vunpack.c.h.bf16 %v766_v30  ;;  %v914_v34 = vunpack.c.h.bf16 %v773_v26  ;;  %v916_v35 = vunpack.c.l.bf16 %v766_v30  ;;  %v781_v39 = vld [vmem:[%s1039_s1] ss:$0 sm:$0xff]  ;;  %v743_v52 = vld [vmem:[%s1042_s4 + $0x10] sm:$0xff]  ;;  %v742_v53 = vld [vmem:[%s1042_s4 + $0x8] sm:$0xff]  ;;  %s590_s1 = sshll.u32 %s819_s22, 4  ;;  %s591_s1 = int_to_ptr.vmem [resolvable:$true] %s590_s1 }
   0x8   :  { %v34_v38 = vadd.s32 8, %v33_v31  ;;  %vm58_vm5 = vcmp.eq.s32.totalorder %v33_v31, %v781_v39  ;;  %v741_v54 = vld [vmem:[%s1042_s4] sm:$0xff] }
   0x9   :  { %194 = vmatpush.bf16.msra.mxu2 %v747_v24  ;;  %v60_v48 = vsel %vm58_vm5, 1.0, %v818_v13  ;;  %v782_v61 = vld [vmem:[%s1043_s5] ss:$0 sm:$0xff] }
   0xa   :  { %39 = vperm.xlu0 %779, %v26_v3   ;;  %45 = vperm.xlu1 %780, %v28_v4   ;;  %vm59_vm6 = vcmp.eq.s32.totalorder %v34_v38, %v781_v39 }
   0xb   :  { %v61_v49 = vsel %vm59_vm6, 1.0, %v818_v13 }
   0xc   :  { %v925_v51 = vpack.c.bf16 %v61_v49, %v60_v48 }
   0xd   :  { %195 = vmatpush.bf16.msra.mxu2 %v746_v25 }
  0x11   :  { %196 = vmatpush.bf16.msra.mxu2 %v745_v28 }
  0x15   :  { %197 = vmatpush.bf16.msra.mxu2 %v744_v32 }
  0x19   :  { %198 = vmatpush.bf16.msra.mxu2 %v743_v52  ;;  %v756_v52 = vld [vmem:[%s1042_s4 + $0x78] sm:$0xff] }
  0x1a   :  { %360 = vmatpush.bf16.msrb.mxu0 %v756_v52 }
  0x1d   :  { %199 = vmatpush.bf16.msra.mxu2 %v742_v53 }
  0x21   :  { %200 = vmatpush.bf16.msra.mxu2 %v741_v54  ;;  %v755_v54 = vld [vmem:[%s1042_s4 + $0x70] sm:$0xff] }
  0x22   :  { %361 = vmatpush.bf16.msrb.mxu0 %v755_v54 }
  0x74   :  { %v37_v9 = vpop.permute.xlu0 %36  ;;  %v43_v11 = vpop.permute.xlu1 %42 }
  0x75   :  { %vm47_vm0 = vcmp.eq.s32.totalorder %v31_v10, %v37_v9  ;;  %vm49_vm3 = vcmp.eq.s32.totalorder %v31_v10, %v43_v11 }
  0x76   :  { %v51_v14 = vsel %vm47_vm0, 1.0, %v818_v13  ;;  %v53_v18 = vsel %vm49_vm3, 1.0, %v818_v13 }
  0x7c   :  { %v40_v12 = vpop.permute.xlu0 %39  ;;  %v46_v17 = vpop.permute.xlu1 %45 }
  0x7d   :  { %vm48_vm1 = vcmp.eq.s32.totalorder %v31_v10, %v40_v12  ;;  %vm50_vm4 = vcmp.eq.s32.totalorder %v31_v10, %v46_v17 }
  0x7e   :  { %v52_v15 = vsel %vm48_vm1, 1.0, %v818_v13  ;;  %v54_v19 = vsel %vm50_vm4, 1.0, %v818_v13 }
  0x7f   :  { %v881_v16 = vpack.c.bf16 %v52_v15, %v51_v14  ;;  %v885_v20 = vpack.c.bf16 %v54_v19, %v53_v18 }
  0x81   :  { %604 = vmatmul.msk.bf16.vlgmr.msra.gmra.mxu0 %vm74_vm2, %v881_v16 }
  0x91   :  { %605 = vmatmul.msk.bf16.gmra.mxu0 %vm74_vm2, %v885_v20 }
  0xfe   :  { %v90_v21 = vpop.f32.mrf.mxu0 }
  0xff   :  { %v91_v42 = vadd.f32 %v916_v35, %v90_v21 }
 0x101   :  { %v100_v47 = vmax.f32 %v91_v42, 0.0 }
 0x106   :  { %v92_v23 = vpop.f32.mrf.mxu0 }
 0x107   :  { %v93_v40 = vadd.f32 %v912_v33, %v92_v23 }
 0x109   :  { %v101_v45 = vmax.f32 %v93_v40, 0.0  ;;  %v142_v40 = vld [vmem:[%s1043_s5 + $0x2] sm:$0x1] }
 0x10b   :  { %v104_v50 = vpack.c.bf16 %v101_v45, %v100_v47 }
 0x10e   :  { %v95_v27 = vpop.f32.mrf.mxu0 }
 0x10f   :  { %v96_v36 = vadd.f32 %v904_v29, %v95_v27 }
 0x111   :  { %v102_v43 = vmax.f32 %v96_v36, 0.0  ;;  %v141_v36 = vld [vmem:[%s1043_s5 + $0x1] sm:$0x1] }
 0x116   :  { %v97_v37 = vpop.f32.mrf.mxu0 }
 0x117   :  { %v98_v41 = vadd.f32 %v914_v34, %v97_v37 }
 0x119   :  { %v103_v44 = vmax.f32 %v98_v41, 0.0 }
 0x11b   :  { %v105_v46 = vpack.c.bf16 %v103_v44, %v102_v43 }
 0x11d   :  { %116 = vmatpush.bf16.msra.mxu1 %v105_v46 }
 0x121   :  { %117 = vmatpush.bf16.msra.mxu1 %v104_v50 }
 0x124   :  { %606 = vmatmul.msk.bf16.vlgmr.msra.gmra.mxu1 %vm106_vm7, %v925_v51 }
 0x1a1   :  { %v119_v55 = vpop.f32.mrf.mxu1 }
 0x1a2   :  { %v120_v57 = vadd.f32 %v119_v55, %v872_v5  ;;  %v754_v55 = vld [vmem:[%s1042_s4 + $0x68] sm:$0xff] }
 0x1a3   :  { %362 = vmatpush.bf16.msrb.mxu0 %v754_v55  ;;  %v308_v55 = vld [vmem:[%s1043_s5 + $0x4] sm:$0x1] }
 0x1a9   :  { %v121_v56 = vpop.f32.mrf.mxu1 }
 0x1aa   :  { %v122_v58 = vadd.f32 %v121_v56, %v877_v6 }
 0x1ac   :  { %v143_v59 = vpack.c.bf16 %v122_v58, %v120_v57  ;;  %v753_v57 = vld [vmem:[%s1042_s4 + $0x60] sm:$0xff]  ;;  %v752_v58 = vld [vmem:[%s1042_s4 + $0x58] sm:$0xff] }
 0x1ad   :  { %363 = vmatpush.bf16.msrb.mxu0 %v753_v57 }
 0x1ae   :  { %201 = vmatmul.bf16.vlgmr.msra.gmra.mxu2 %v143_v59 }
 0x1b1   :  { %364 = vmatpush.bf16.msrb.mxu0 %v752_v58 }
 0x231   :  { %v202_v60 = vpop.f32.mrf.mxu2 }
 0x232   :  { %v203_v62 = vadd.f32 %v782_v61, %v202_v60 }
 0x234   :  { %v207_v0 = vmax.f32 %v203_v62, 0.0 }
 0x236   :  { %v217_v3 = vmul.f32 %v207_v0, %v207_v0 }
 0x239   :  { %v204_v63 = vpop.f32.mrf.mxu2 }
 0x23a   :  { %v205_v1 = vadd.f32 %v782_v61, %v204_v63 }
 0x23c   :  { %v208_v2 = vmax.f32 %v205_v1, 0.0 }
 0x23e   :  { %v209_v4 = vadd.f32 %v208_v2, %v207_v0  ;;  %v218_v7 = vmul.f32 %v208_v2, %v208_v2 }
 0x240   :  { %v210_v8 = vrot.slane %v209_v4, 4  ;;  %v219_v9 = vadd.f32 %v218_v7, %v217_v3 }
 0x242   :  { %v211_v5 = vadd.f32 %v210_v8, %v209_v4  ;;  %v220_v10 = vrot.slane %v219_v9, 4  ;;  %v751_v8 = vld [vmem:[%s1042_s4 + $0x50] sm:$0xff] }
 0x243   :  { %365 = vmatpush.bf16.msrb.mxu0 %v751_v8  ;;  %v764_v8 = vld [vmem:[%s1042_s4 + $0xb8] sm:$0xff] }
 0x244   :  { %v212_v6 = vrot.slane %v211_v5, 2  ;;  %v221_v11 = vadd.f32 %v220_v10, %v219_v9  ;;  %v750_v9 = vld [vmem:[%s1042_s4 + $0x48] sm:$0xff]  ;;  %527 = vmatpush.bf16.msrb.mxu2 %v764_v8 }
 0x245   :  { %v476_v8 = vld [vmem:[%s1043_s5 + $0x8] sm:$0x1] }
 0x246   :  { %v213_v12 = vadd.f32 %v212_v6, %v211_v5  ;;  %v222_v13 = vrot.slane %v221_v11, 2  ;;  %v749_v5 = vld [vmem:[%s1042_s4 + $0x40] sm:$0xff] }
 0x247   :  { %366 = vmatpush.bf16.msrb.mxu0 %v750_v9 }
 0x248   :  { %v223_v14 = vadd.f32 %v222_v13, %v221_v11  ;;  %v214_v15 = vrot.slane %v213_v12, 1 }
 0x24a   :  { %v224_v17 = vrot.slane %v223_v14, 1  ;;  %v215_v18 = vadd.f32 %v214_v15, %v213_v12  ;;  %v783_v15 = vld [vmem:[%s1043_s5 + $0x3] ss:$0 sm:$0xff] }
 0x24b   :  { %367 = vmatpush.bf16.msrb.mxu0 %v749_v5  ;;  %v763_v5 = vld [vmem:[%s1042_s4 + $0xb0] sm:$0xff] }
 0x24c   :  { %v225_v19 = vadd.f32 %v224_v17, %v223_v14  ;;  %v216_v21 = vmul.f32 0.0625, %v215_v18  ;;  %528 = vmatpush.bf16.msrb.mxu2 %v763_v5 }
 0x24e   :  { %v226_v22 = vmul.f32 0.0625, %v225_v19  ;;  %v227_v23 = vmul.f32 %v216_v21, %v216_v21 }
 0x250   :  { %v228_v24 = vsub.f32 %v226_v22, %v227_v23 }
 0x252   :  { %v229_v25 = vmax.f32 %v228_v24, 0.0 }
 0x254   :  { %v230_v26 = vadd.f32 1e-05, %v229_v25 }
 0x256   :  { %785 = vrsqrt.f32 %v230_v26  ;;  %vm237_vm9 = vweird.f32 %v230_v26 }
 0x25c   :  { %v786_v27 = vpop.eup %785 }
 0x25d   :  { %v232_v28 = vmul.f32 %v786_v27, %v230_v26  ;;  %vm238_vm8 = vweird.f32 %v786_v27 }
 0x25e   :  { %vm239_vm10 = vmor %vm237_vm9, %vm238_vm8 }
 0x25f   :  { %v233_v30 = vmul.f32 %v786_v27, %v232_v28 }
 0x261   :  { %v234_v31 = vmul.f32 0.5, %v233_v30 }
 0x263   :  { %v235_v32 = vsub.f32 1.5, %v234_v31 }
 0x265   :  { %v236_v37 = vmul.f32 %v786_v27, %v235_v32 }
 0x267   :  { %v240_v38 = vsel %vm239_vm10, %v786_v27, %v236_v37 }
 0x268   :  { %v241_v39 = vmul.f32 %v240_v38, %v141_v36 }
 0x26a   :  { %v242_v41 = vmul.f32 %v241_v39, %v216_v21  ;;  %v244_v42 = vperm.slane %v241_v39, 0 }
 0x26c   :  { %v243_v43 = vsub.f32 %v142_v40, %v242_v41  ;;  %v245_v44 = vmul.f32 %v244_v42, %v207_v0  ;;  %v246_v45 = vmul.f32 %v244_v42, %v208_v2 }
 0x26e   :  { %v247_v46 = vperm.slane %v243_v43, 0 }
 0x270   :  { %v248_v47 = vadd.f32 %v247_v46, %v245_v44  ;;  %v249_v48 = vadd.f32 %v247_v46, %v246_v45 }
 0x272   :  { %v250_v49 = vpack.c.bf16 %v249_v48, %v248_v47 }
 0x274   :  { %258 = vmatpush.bf16.msra.mxu3 %v250_v49 }
 0x277   :  { %639 = vmatmul.msk.bf16.vlgmr.msra.gmra.mxu3 %vm74_vm2, %v881_v16 }
 0x287   :  { %640 = vmatmul.msk.bf16.gmra.mxu3 %vm74_vm2, %v885_v20 }
 0x2fa   :  { %v260_v50 = vpop.f32.mrf.mxu3 }
 0x2fb   :  { %v261_v63 = vadd.f32 %v916_v35, %v260_v50 }
 0x2fd   :  { %v270_v4 = vmax.f32 %v261_v63, 0.0 }
 0x302   :  { %v262_v53 = vpop.f32.mrf.mxu3 }
 0x303   :  { %v263_v61 = vadd.f32 %v912_v33, %v262_v53 }
 0x305   :  { %v271_v2 = vmax.f32 %v263_v61, 0.0 }
 0x307   :  { %v274_v7 = vpack.c.bf16 %v271_v2, %v270_v4 }
 0x30a   :  { %v265_v56 = vpop.f32.mrf.mxu3 }
 0x30b   :  { %v266_v59 = vadd.f32 %v904_v29, %v265_v56 }
 0x30d   :  { %v272_v0 = vmax.f32 %v266_v59, 0.0  ;;  %v309_v59 = vld [vmem:[%s1043_s5 + $0x5] sm:$0x1] }
 0x312   :  { %v267_v60 = vpop.f32.mrf.mxu3 }
 0x313   :  { %v268_v62 = vadd.f32 %v914_v34, %v267_v60 }
 0x315   :  { %v273_v1 = vmax.f32 %v268_v62, 0.0 }
 0x317   :  { %v275_v3 = vpack.c.bf16 %v273_v1, %v272_v0 }
 0x319   :  { %282 = vmatpush.bf16.msrb.mxu1 %v275_v3 }
 0x31d   :  { %283 = vmatpush.bf16.msrb.mxu1 %v274_v7 }
 0x320   :  { %641 = vmatmul.msk.bf16.vlgmr.msrb.gmra.mxu1 %vm106_vm7, %v925_v51 }
 0x39d   :  { %v285_v10 = vpop.f32.mrf.mxu1 }
 0x39e   :  { %v286_v11 = vadd.f32 %v285_v10, %v248_v47  ;;  %v762_v10 = vld [vmem:[%s1042_s4 + $0xa8] sm:$0xff] }
 0x39f   :  { %529 = vmatpush.bf16.msrb.mxu2 %v762_v10 }
 0x3a5   :  { %v287_v6 = vpop.f32.mrf.mxu1 }
 0x3a6   :  { %v288_v12 = vadd.f32 %v287_v6, %v249_v48  ;;  %v760_v6 = vld [vmem:[%s1042_s4 + $0x98] sm:$0xff] }
 0x3a8   :  { %v310_v13 = vpack.c.bf16 %v288_v12, %v286_v11 }
 0x3aa   :  { %368 = vmatmul.bf16.vlgmr.msrb.gmra.mxu0 %v310_v13 }
 0x427   :  { %v369_v14 = vpop.f32.mrf.mxu0 }
 0x428   :  { %v370_v17 = vadd.f32 %v783_v15, %v369_v14 }
 0x42a   :  { %v374_v19 = vmax.f32 %v370_v17, 0.0 }
 0x42c   :  { %v384_v23 = vmul.f32 %v374_v19, %v374_v19 }
 0x42f   :  { %v371_v18 = vpop.f32.mrf.mxu0 }
 0x430   :  { %v372_v21 = vadd.f32 %v783_v15, %v371_v18 }
 0x432   :  { %v375_v22 = vmax.f32 %v372_v21, 0.0 }
 0x434   :  { %v376_v24 = vadd.f32 %v375_v22, %v374_v19  ;;  %v385_v25 = vmul.f32 %v375_v22, %v375_v22 }
 0x436   :  { %v377_v26 = vrot.slane %v376_v24, 4  ;;  %v386_v27 = vadd.f32 %v385_v25, %v384_v23 }
 0x438   :  { %v378_v28 = vadd.f32 %v377_v26, %v376_v24  ;;  %v387_v30 = vrot.slane %v386_v27, 4 }
 0x43a   :  { %v379_v31 = vrot.slane %v378_v28, 2  ;;  %v388_v32 = vadd.f32 %v387_v30, %v386_v27 }
 0x43c   :  { %v380_v36 = vadd.f32 %v379_v31, %v378_v28  ;;  %v389_v37 = vrot.slane %v388_v32, 2  ;;  %v784_v28 = vld [vmem:[%s1043_s5 + $0x6] ss:$0 sm:$0xff] }
 0x43e   :  { %v381_v38 = vrot.slane %v380_v36, 1  ;;  %v390_v39 = vadd.f32 %v389_v37, %v388_v32 }
 0x440   :  { %v391_v40 = vrot.slane %v390_v39, 1  ;;  %v382_v41 = vadd.f32 %v381_v38, %v380_v36 }
 0x442   :  { %v392_v42 = vadd.f32 %v391_v40, %v390_v39  ;;  %v383_v43 = vmul.f32 0.0625, %v382_v41 }
 0x444   :  { %v393_v44 = vmul.f32 0.0625, %v392_v42  ;;  %v394_v45 = vmul.f32 %v383_v43, %v383_v43 }
 0x446   :  { %v395_v46 = vsub.f32 %v393_v44, %v394_v45 }
 0x448   :  { %v396_v47 = vmax.f32 %v395_v46, 0.0 }
 0x44a   :  { %v397_v48 = vadd.f32 1e-05, %v396_v47 }
 0x44c   :  { %787 = vrsqrt.f32 %v397_v48  ;;  %vm404_vm12 = vweird.f32 %v397_v48 }
 0x452   :  { %v788_v49 = vpop.eup %787 }
 0x453   :  { %v399_v50 = vmul.f32 %v788_v49, %v397_v48  ;;  %vm405_vm11 = vweird.f32 %v788_v49 }
 0x454   :  { %vm406_vm13 = vmor %vm404_vm12, %vm405_vm11 }
 0x455   :  { %v400_v52 = vmul.f32 %v788_v49, %v399_v50 }
 0x457   :  { %v401_v53 = vmul.f32 0.5, %v400_v52 }
 0x459   :  { %v402_v54 = vsub.f32 1.5, %v401_v53 }
 0x45b   :  { %v403_v56 = vmul.f32 %v788_v49, %v402_v54 }
 0x45d   :  { %v407_v57 = vsel %vm406_vm13, %v788_v49, %v403_v56 }
 0x45e   :  { %v408_v58 = vmul.f32 %v407_v57, %v308_v55 }
 0x460   :  { %v409_v60 = vmul.f32 %v408_v58, %v383_v43  ;;  %v411_v61 = vperm.slane %v408_v58, 0 }
 0x462   :  { %v410_v62 = vsub.f32 %v309_v59, %v409_v60  ;;  %v412_v63 = vmul.f32 %v411_v61, %v374_v19  ;;  %v413_v0 = vmul.f32 %v411_v61, %v375_v22 }
 0x464   :  { %v414_v1 = vperm.slane %v410_v62, 0 }
 0x466   :  { %v415_v2 = vadd.f32 %v414_v1, %v412_v63  ;;  %v416_v3 = vadd.f32 %v414_v1, %v413_v0 }
 0x468   :  { %v417_v4 = vpack.c.bf16 %v416_v3, %v415_v2 }
 0x46a   :  { %425 = vmatpush.bf16.msrb.mxu3 %v417_v4 }
 0x46d   :  { %690 = vmatmul.msk.bf16.vlgmr.msrb.gmra.mxu3 %vm74_vm2, %v881_v16 }
 0x47d   :  { %691 = vmatmul.msk.bf16.gmra.mxu3 %vm74_vm2, %v885_v20  ;;  %v761_v20 = vld [vmem:[%s1042_s4 + $0xa0] sm:$0xff] }
 0x47e   :  { %530 = vmatpush.bf16.msrb.mxu2 %v761_v20 }
 0x482   :  { %531 = vmatpush.bf16.msrb.mxu2 %v760_v6 }
 0x4f0   :  { %v427_v7 = vpop.f32.mrf.mxu3 }
 0x4f1   :  { %v428_v15 = vadd.f32 %v916_v35, %v427_v7 }
 0x4f3   :  { %v437_v22 = vmax.f32 %v428_v15, 0.0 }
 0x4f8   :  { %v429_v9 = vpop.f32.mrf.mxu3 }
 0x4f9   :  { %v430_v13 = vadd.f32 %v912_v33, %v429_v9  ;;  %v758_v33 = vld [vmem:[%s1042_s4 + $0x88] sm:$0xff] }
 0x4fb   :  { %v438_v19 = vmax.f32 %v430_v13, 0.0 }
 0x4fd   :  { %v441_v23 = vpack.c.bf16 %v438_v19, %v437_v22 }
 0x500   :  { %v432_v16 = vpop.f32.mrf.mxu3 }
 0x501   :  { %v433_v11 = vadd.f32 %v904_v29, %v432_v16  ;;  %v759_v29 = vld [vmem:[%s1042_s4 + $0x90] sm:$0xff] }
 0x502   :  { %532 = vmatpush.bf16.msrb.mxu2 %v759_v29 }
 0x503   :  { %v439_v17 = vmax.f32 %v433_v11, 0.0 }
 0x506   :  { %533 = vmatpush.bf16.msrb.mxu2 %v758_v33 }
 0x508   :  { %v434_v12 = vpop.f32.mrf.mxu3 }
 0x509   :  { %v435_v14 = vadd.f32 %v914_v34, %v434_v12  ;;  %v757_v34 = vld [vmem:[%s1042_s4 + $0x80] sm:$0xff] }
 0x50a   :  { %534 = vmatpush.bf16.msrb.mxu2 %v757_v34 }
 0x50b   :  { %v440_v18 = vmax.f32 %v435_v14, 0.0 }
 0x50d   :  { %v442_v21 = vpack.c.bf16 %v440_v18, %v439_v17 }
 0x50f   :  { %449 = vmatpush.bf16.msra.mxu1 %v442_v21 }
 0x513   :  { %450 = vmatpush.bf16.msra.mxu1 %v441_v23 }
 0x516   :  { %692 = vmatmul.msk.bf16.vlgmr.msra.gmra.mxu1 %vm106_vm7, %v925_v51 }
 0x593   :  { %v452_v35 = vpop.f32.mrf.mxu1 }
 0x594   :  { %v453_v25 = vadd.f32 %v452_v35, %v415_v2  ;;  %v475_v2 = vld [vmem:[%s1043_s5 + $0x7] sm:$0x1]  ;;  %s821_s5 = smov 8  }
 0x59b   :  { %v454_v24 = vpop.f32.mrf.mxu1 }
 0x59c   :  { %v455_v26 = vadd.f32 %v454_v24, %v416_v3 }
 0x59e   :  { %v477_v51 = vpack.c.bf16 %v455_v26, %v453_v25 }
 0x5a0   :  { %535 = vmatmul.bf16.vlgmr.msrb.gmra.mxu2 %v477_v51 }
 0x623   :  { %v536_v27 = vpop.f32.mrf.mxu2 }
 0x624   :  { %v537_v30 = vadd.f32 %v784_v28, %v536_v27 }
 0x626   :  { %v541_v32 = vmax.f32 %v537_v30, 0.0 }
 0x628   :  { %v551_v38 = vmul.f32 %v541_v32, %v541_v32 }
 0x62b   :  { %v538_v31 = vpop.f32.mrf.mxu2 }
 0x62c   :  { %v539_v36 = vadd.f32 %v784_v28, %v538_v31 }
 0x62e   :  { %v542_v37 = vmax.f32 %v539_v36, 0.0 }
 0x630   :  { %v543_v39 = vadd.f32 %v542_v37, %v541_v32  ;;  %v552_v40 = vmul.f32 %v542_v37, %v542_v37 }
 0x632   :  { %v544_v41 = vrot.slane %v543_v39, 4  ;;  %v553_v42 = vadd.f32 %v552_v40, %v551_v38 }
 0x634   :  { %v545_v43 = vadd.f32 %v544_v41, %v543_v39  ;;  %v554_v44 = vrot.slane %v553_v42, 4 }
 0x636   :  { %v546_v45 = vrot.slane %v545_v43, 2  ;;  %v555_v46 = vadd.f32 %v554_v44, %v553_v42 }
 0x638   :  { %v547_v47 = vadd.f32 %v546_v45, %v545_v43  ;;  %v556_v48 = vrot.slane %v555_v46, 2 }
 0x63a   :  { %v548_v49 = vrot.slane %v547_v47, 1  ;;  %v557_v50 = vadd.f32 %v556_v48, %v555_v46 }
 0x63c   :  { %v549_v52 = vadd.f32 %v548_v49, %v547_v47  ;;  %v558_v53 = vrot.slane %v557_v50, 1 }
 0x63e   :  { %v550_v54 = vmul.f32 0.0625, %v549_v52  ;;  %v559_v55 = vadd.f32 %v558_v53, %v557_v50 }
 0x640   :  { %v560_v56 = vmul.f32 0.0625, %v559_v55  ;;  %v561_v57 = vmul.f32 %v550_v54, %v550_v54 }
 0x642   :  { %v562_v58 = vsub.f32 %v560_v56, %v561_v57 }
 0x644   :  { %v563_v59 = vmax.f32 %v562_v58, 0.0 }
 0x646   :  { %v564_v60 = vadd.f32 1e-05, %v563_v59 }
 0x648   :  { %789 = vrsqrt.f32 %v564_v60  ;;  %vm571_vm15 = vweird.f32 %v564_v60 }
 0x64e   :  { %v790_v61 = vpop.eup %789 }
 0x64f   :  { %v566_v62 = vmul.f32 %v790_v61, %v564_v60  ;;  %vm572_vm14 = vweird.f32 %v790_v61 }
 0x650   :  { %vm573_vm0 = vmor %vm571_vm15, %vm572_vm14 }
 0x651   :  { %v567_v63 = vmul.f32 %v790_v61, %v566_v62 }
 0x653   :  { %v568_v0 = vmul.f32 0.5, %v567_v63 }
 0x655   :  { %v569_v1 = vsub.f32 1.5, %v568_v0 }
 0x657   :  { %v570_v3 = vmul.f32 %v790_v61, %v569_v1 }
 0x659   :  { %v574_v4 = vsel %vm573_vm0, %v790_v61, %v570_v3 }
 0x65a   :  { %v575_v7 = vmul.f32 %v574_v4, %v475_v2 }
 0x65c   :  { %v576_v9 = vmul.f32 %v575_v7, %v550_v54  ;;  %v578_v5 = vperm.slane %v575_v7, 0 }
 0x65e   :  { %v577_v10 = vsub.f32 %v476_v8, %v576_v9  ;;  %v579_v16 = vmul.f32 %v578_v5, %v541_v32  ;;  %v580_v20 = vmul.f32 %v578_v5, %v542_v37 }
 0x660   :  { %v581_v6 = vperm.slane %v577_v10, 0 }
 0x662   :  { %v582_v11 = vadd.f32 %v581_v6, %v579_v16  ;;  %v583_v12 = vadd.f32 %v581_v6, %v580_v20 }
 0x664   :  { %585 = vst [vmem:[#allocation2 + $0x8] sm:$0xff] %v583_v12 }
 0x665   :  { %584 = vst [vmem:[#allocation2] sm:$0xff] %v582_v11 }
 0x666   :  { %598 = dma.vmem_to_hbm [thread:$0]  %s591_s1, 256, %s593_s24, [#allocation3], %s820_s25, %s820_s25, %s821_s5  }
 0x667   :  { %815 = dma.done.wait [#allocation3], 256  }
 0x668   :  { %816 = vsyncadd [#allocation3], 4294967040 }
 0x669   :  { %603 = vsyncpa [#allocation3], 1 }

</bundles_post_ra>
